<compile_context>
chip_gen: v7x
topology: tpu7x:2x2x1
jax: 0.10.0
libtpu: 0.0.40
codegen_flags: <defaults>
</compile_context>

<pallas_src>
import functools

import jax
import jax.numpy as jnp
from jax.experimental import pallas as pl
from jax.experimental.pallas import tpu as pltpu


def _decoder_kernel(x_ref, wf_ref, shift_ref, wl_ref, bl_ref, out_ref, *, H, W, Np):
    # x_ref:     (H+2, (W+2)*Np, Cin)   spatially zero-padded, batch padded to Np=8
    # wf_ref:    (9, Cin, Cout)         BN-folded conv weights, tap-major (ky*3+kx)
    # shift_ref: (1, Cout)              BN-folded conv bias
    # wl_ref:    (P*Cout, 128)          Linear weight, permuted to p*Cout+c, lane-padded
    # bl_ref:    (1, 128)               Linear bias, lane-padded
    # out_ref:   (Np, 128)
    Cin = x_ref.shape[-1]
    M = H * W * Np

    # Conv2d(3x3, pad=1): 9 accumulating MXU matmuls over static, 8-sublane-aligned
    # slices of the pre-padded input block. Rows ordered (h, w, n).
    y = None
    for ky in range(3):
        for kx in range(3):
            lhs = x_ref[ky:ky + H, kx * Np:(kx + W) * Np, :].reshape(M, Cin)
            t = jnp.dot(lhs, wf_ref[ky * 3 + kx],
                        preferred_element_type=jnp.float32)
            y = t if y is None else y + t

    # Folded BatchNorm shift + ReLU (Dropout == identity in eval mode).
    y = jnp.maximum(y + shift_ref[...], 0.0)            # (H*W*Np, Cout)

    # MaxPool2d(2,2) + Flatten: pooled (Np, Cout) blocks, concatenated along lanes in
    # p-major order -> lane-dense (Np, P*Cout) = (8, 128) slab kept in vregs.
    def rows(h, w):
        s = (h * W + w) * Np
        return y[s:s + Np]                               # (Np, Cout), 8-aligned slice

    blocks = []
    for ph in range(H // 2):
        for pw in range(W // 2):
            blocks.append(jnp.maximum(
                jnp.maximum(rows(2 * ph, 2 * pw), rows(2 * ph, 2 * pw + 1)),
                jnp.maximum(rows(2 * ph + 1, 2 * pw), rows(2 * ph + 1, 2 * pw + 1))))
    flat = jnp.concatenate(blocks, axis=1)               # (Np, P*Cout)

    # Linear(128, 2), lane-padded to 128 outputs -> unmasked full-tile store.
    out_ref[...] = jnp.dot(flat, wl_ref[...],
                           preferred_element_type=jnp.float32) + bl_ref[...]


def fold_decoder_params(wc, bc, gamma, beta, running_mean, running_var, wl, bl,
                        eps=1e-5):
    """One-time (hoisted) folding of BN into the conv and permutation of the Linear."""
    Cout, Cin, KH, KW = wc.shape
    num_out, feat = wl.shape
    P = feat // Cout

    inv_std = 1.0 / jnp.sqrt(running_var.astype(jnp.float32) + eps)
    scale = gamma.astype(jnp.float32) * inv_std                               # (Cout,)

    # wf[ky*KW+kx, i, c] = wc[c, i, ky, kx] * scale[c]
    wf = jnp.transpose(wc.astype(jnp.float32), (2, 3, 1, 0)).reshape(KH * KW, Cin, Cout)
    wf = wf * scale[None, None, :]
    shift = (scale * (bc.astype(jnp.float32) - running_mean.astype(jnp.float32))
             + beta.astype(jnp.float32)).reshape(1, Cout)

    # PyTorch Flatten of (N, Cout, PH, PW) uses f = c*P + p; the kernel slab uses
    # p*Cout + c, so permute wl accordingly and lane-pad the 2 outputs to 128.
    wl_r = jnp.transpose(wl.astype(jnp.float32).reshape(num_out, Cout, P), (2, 1, 0))
    wl_r = wl_r.reshape(P * Cout, num_out)
    wl_pad = jnp.pad(wl_r, ((0, 0), (0, 128 - num_out)))
    bl_pad = jnp.pad(bl.astype(jnp.float32).reshape(1, num_out),
                     ((0, 0), (0, 128 - num_out)))
    return wf, shift, wl_pad, bl_pad


@functools.partial(jax.jit, static_argnames=("num_out",))
def decoder_forward(x, wf, shift, wl_pad, bl_pad, *, num_out=2):
    N, Cin, H, W = x.shape
    Np = max(8, -(-N // 8) * 8)          # sublane-align the batch

    # Layout prep (single fused XLA prologue under jit): NCHW -> (H, W, N, Cin),
    # zero-pad spatial by 1 (conv padding) and batch to Np, merge (W+2, Np).
    xt = jnp.transpose(x.astype(jnp.float32), (2, 3, 0, 1))
    xt = jnp.pad(xt, ((1, 1), (1, 1), (0, Np - N), (0, 0)))
    xt = xt.reshape(H + 2, (W + 2) * Np, Cin)

    kernel = functools.partial(_decoder_kernel, H=H, W=W, Np=Np)
    vmem = pltpu.MemorySpace.VMEM
    out_pad = pl.pallas_call(
        kernel,
        out_shape=jax.ShapeDtypeStruct((Np, 128), jnp.float32),
        in_specs=[pl.BlockSpec(memory_space=vmem)] * 5,
        out_specs=pl.BlockSpec(memory_space=vmem),
    )(xt, wf, shift, wl_pad, bl_pad)
    return out_pad[:N, :num_out]


def decoder_reference(x, wc, bc, gamma, beta, rmean, rvar, wl, bl, eps=1e-5):
    conv = jax.lax.conv_general_dilated(
        x, wc, window_strides=(1, 1), padding=((1, 1), (1, 1)),
        dimension_numbers=("NCHW", "OIHW", "NCHW")) + bc[None, :, None, None]
    bn = (conv - rmean[None, :, None, None]) / jnp.sqrt(rvar[None, :, None, None] + eps)
    bn = bn * gamma[None, :, None, None] + beta[None, :, None, None]
    r = jnp.maximum(bn, 0.0)
    pooled = jax.lax.reduce_window(r, -jnp.inf, jax.lax.max,
                                   (1, 1, 2, 2), (1, 1, 2, 2), "VALID")
    flat = pooled.reshape(x.shape[0], -1)
    return flat @ wl.T + bl


if __name__ == "__main__":
    key = jax.random.PRNGKey(0)
    ks = jax.random.split(key, 8)

    N, Cin, H, W = 2, 64, 4, 4     # Linear(128, 2) => 32 * (H/2) * (W/2) == 128
    Cout = 32

    x = jax.random.normal(ks[0], (N, Cin, H, W), jnp.float32)

    # deterministic synthetic parameters (shapes from the module __init__)
    wc = 0.05 * jax.random.normal(ks[1], (Cout, Cin, 3, 3), jnp.float32)
    bc = 0.1 * jax.random.normal(ks[2], (Cout,), jnp.float32)
    gamma = 1.0 + 0.1 * jax.random.normal(ks[3], (Cout,), jnp.float32)
    beta = 0.1 * jax.random.normal(ks[4], (Cout,), jnp.float32)
    running_mean = 0.05 * jax.random.normal(ks[6], (Cout,), jnp.float32)
    running_var = 1.0 + 0.1 * jax.random.uniform(ks[7], (Cout,), jnp.float32)
    wl = 0.05 * jax.random.normal(ks[5], (2, 128), jnp.float32)
    bl = jnp.array([0.01, -0.02], jnp.float32)

    # One-time constant folding (hoisted out of the per-call hot path).
    folded = fold_decoder_params(wc, bc, gamma, beta, running_mean, running_var, wl, bl)
    folded = jax.block_until_ready(folded)

    out = decoder_forward(x, *folded, num_out=2)
    out = jax.block_until_ready(out)

    ref = decoder_reference(x, wc, bc, gamma, beta, running_mean, running_var, wl, bl)
    ref = jax.block_until_ready(ref)

    assert out.shape == (N, 2), out.shape
    assert jnp.allclose(out, ref, rtol=1e-4, atol=1e-4), (out, ref)
    print("KERNEL_OK")
</pallas_src>

<mosaic_0001>
module attributes {stable_mosaic.version = 11 : i64} {
  func.func @_decoder_kernel(%arg0: memref<6x48x64xf32, #tpu.memory_space<vmem>>, %arg1: memref<9x64x32xf32, #tpu.memory_space<vmem>>, %arg2: memref<1x32xf32, #tpu.memory_space<vmem>>, %arg3: memref<128x128xf32, #tpu.memory_space<vmem>>, %arg4: memref<1x128xf32, #tpu.memory_space<vmem>>, %arg5: memref<8x128xf32, #tpu.memory_space<vmem>>) attributes {dimension_semantics = [], scalar_prefetch = 0 : i64, scratch_operands = 0 : i64, tpu.core_type = #tpu.core_type<tc>} {
    %c0 = arith.constant 0 : index
    %c0_0 = arith.constant 0 : index
    %c0_1 = arith.constant 0 : index
    %0 = vector.load %arg0[%c0, %c0_0, %c0_1] : memref<6x48x64xf32, #tpu.memory_space<vmem>>, vector<4x32x64xf32>
    %1 = vector.shape_cast %0 : vector<4x32x64xf32> to vector<128x64xf32>
    %c0_2 = arith.constant 0 : index
    %c0_3 = arith.constant 0 : index
    %c0_4 = arith.constant 0 : index
    %2 = vector.load %arg1[%c0_2, %c0_3, %c0_4] : memref<9x64x32xf32, #tpu.memory_space<vmem>>, vector<1x64x32xf32>
    %3 = vector.shape_cast %2 : vector<1x64x32xf32> to vector<64x32xf32>
    %cst = arith.constant dense<0.000000e+00> : vector<128x32xf32>
    %4 = tpu.matmul %1, %3, %cst {dimension_numbers = #tpu.dot_dimension_numbers<[1], [0], [0], [1], [0, 0, 1, 1], [], []>} : vector<128x64xf32>, vector<64x32xf32>, vector<128x32xf32> -> vector<128x32xf32>
    %c0_5 = arith.constant 0 : index
    %c8 = arith.constant 8 : index
    %c0_6 = arith.constant 0 : index
    %5 = vector.load %arg0[%c0_5, %c8, %c0_6] : memref<6x48x64xf32, #tpu.memory_space<vmem>>, vector<4x32x64xf32>
    %6 = vector.shape_cast %5 : vector<4x32x64xf32> to vector<128x64xf32>
    %c1 = arith.constant 1 : index
    %c0_7 = arith.constant 0 : index
    %c0_8 = arith.constant 0 : index
    %7 = vector.load %arg1[%c1, %c0_7, %c0_8] : memref<9x64x32xf32, #tpu.memory_space<vmem>>, vector<1x64x32xf32>
    %8 = vector.shape_cast %7 : vector<1x64x32xf32> to vector<64x32xf32>
    %cst_9 = arith.constant dense<0.000000e+00> : vector<128x32xf32>
    %9 = tpu.matmul %6, %8, %cst_9 {dimension_numbers = #tpu.dot_dimension_numbers<[1], [0], [0], [1], [0, 0, 1, 1], [], []>} : vector<128x64xf32>, vector<64x32xf32>, vector<128x32xf32> -> vector<128x32xf32>
    %10 = arith.addf %4, %9 : vector<128x32xf32>
    %c0_10 = arith.constant 0 : index
    %c16 = arith.constant 16 : index
    %c0_11 = arith.constant 0 : index
    %11 = vector.load %arg0[%c0_10, %c16, %c0_11] : memref<6x48x64xf32, #tpu.memory_space<vmem>>, vector<4x32x64xf32>
    %12 = vector.shape_cast %11 : vector<4x32x64xf32> to vector<128x64xf32>
    %c2 = arith.constant 2 : index
    %c0_12 = arith.constant 0 : index
    %c0_13 = arith.constant 0 : index
    %13 = vector.load %arg1[%c2, %c0_12, %c0_13] : memref<9x64x32xf32, #tpu.memory_space<vmem>>, vector<1x64x32xf32>
    %14 = vector.shape_cast %13 : vector<1x64x32xf32> to vector<64x32xf32>
    %cst_14 = arith.constant dense<0.000000e+00> : vector<128x32xf32>
    %15 = tpu.matmul %12, %14, %cst_14 {dimension_numbers = #tpu.dot_dimension_numbers<[1], [0], [0], [1], [0, 0, 1, 1], [], []>} : vector<128x64xf32>, vector<64x32xf32>, vector<128x32xf32> -> vector<128x32xf32>
    %16 = arith.addf %10, %15 : vector<128x32xf32>
    %c1_15 = arith.constant 1 : index
    %c0_16 = arith.constant 0 : index
    %c0_17 = arith.constant 0 : index
    %17 = vector.load %arg0[%c1_15, %c0_16, %c0_17] : memref<6x48x64xf32, #tpu.memory_space<vmem>>, vector<4x32x64xf32>
    %18 = vector.shape_cast %17 : vector<4x32x64xf32> to vector<128x64xf32>
    %c3 = arith.constant 3 : index
    %c0_18 = arith.constant 0 : index
    %c0_19 = arith.constant 0 : index
    %19 = vector.load %arg1[%c3, %c0_18, %c0_19] : memref<9x64x32xf32, #tpu.memory_space<vmem>>, vector<1x64x32xf32>
    %20 = vector.shape_cast %19 : vector<1x64x32xf32> to vector<64x32xf32>
    %cst_20 = arith.constant dense<0.000000e+00> : vector<128x32xf32>
    %21 = tpu.matmul %18, %20, %cst_20 {dimension_numbers = #tpu.dot_dimension_numbers<[1], [0], [0], [1], [0, 0, 1, 1], [], []>} : vector<128x64xf32>, vector<64x32xf32>, vector<128x32xf32> -> vector<128x32xf32>
    %22 = arith.addf %16, %21 : vector<128x32xf32>
    %c1_21 = arith.constant 1 : index
    %c8_22 = arith.constant 8 : index
    %c0_23 = arith.constant 0 : index
    %23 = vector.load %arg0[%c1_21, %c8_22, %c0_23] : memref<6x48x64xf32, #tpu.memory_space<vmem>>, vector<4x32x64xf32>
    %24 = vector.shape_cast %23 : vector<4x32x64xf32> to vector<128x64xf32>
    %c4 = arith.constant 4 : index
    %c0_24 = arith.constant 0 : index
    %c0_25 = arith.constant 0 : index
    %25 = vector.load %arg1[%c4, %c0_24, %c0_25] : memref<9x64x32xf32, #tpu.memory_space<vmem>>, vector<1x64x32xf32>
    %26 = vector.shape_cast %25 : vector<1x64x32xf32> to vector<64x32xf32>
    %cst_26 = arith.constant dense<0.000000e+00> : vector<128x32xf32>
    %27 = tpu.matmul %24, %26, %cst_26 {dimension_numbers = #tpu.dot_dimension_numbers<[1], [0], [0], [1], [0, 0, 1, 1], [], []>} : vector<128x64xf32>, vector<64x32xf32>, vector<128x32xf32> -> vector<128x32xf32>
    %28 = arith.addf %22, %27 : vector<128x32xf32>
    %c1_27 = arith.constant 1 : index
    %c16_28 = arith.constant 16 : index
    %c0_29 = arith.constant 0 : index
    %29 = vector.load %arg0[%c1_27, %c16_28, %c0_29] : memref<6x48x64xf32, #tpu.memory_space<vmem>>, vector<4x32x64xf32>
    %30 = vector.shape_cast %29 : vector<4x32x64xf32> to vector<128x64xf32>
    %c5 = arith.constant 5 : index
    %c0_30 = arith.constant 0 : index
    %c0_31 = arith.constant 0 : index
    %31 = vector.load %arg1[%c5, %c0_30, %c0_31] : memref<9x64x32xf32, #tpu.memory_space<vmem>>, vector<1x64x32xf32>
    %32 = vector.shape_cast %31 : vector<1x64x32xf32> to vector<64x32xf32>
    %cst_32 = arith.constant dense<0.000000e+00> : vector<128x32xf32>
    %33 = tpu.matmul %30, %32, %cst_32 {dimension_numbers = #tpu.dot_dimension_numbers<[1], [0], [0], [1], [0, 0, 1, 1], [], []>} : vector<128x64xf32>, vector<64x32xf32>, vector<128x32xf32> -> vector<128x32xf32>
    %34 = arith.addf %28, %33 : vector<128x32xf32>
    %c2_33 = arith.constant 2 : index
    %c0_34 = arith.constant 0 : index
    %c0_35 = arith.constant 0 : index
    %35 = vector.load %arg0[%c2_33, %c0_34, %c0_35] : memref<6x48x64xf32, #tpu.memory_space<vmem>>, vector<4x32x64xf32>
    %36 = vector.shape_cast %35 : vector<4x32x64xf32> to vector<128x64xf32>
    %c6 = arith.constant 6 : index
    %c0_36 = arith.constant 0 : index
    %c0_37 = arith.constant 0 : index
    %37 = vector.load %arg1[%c6, %c0_36, %c0_37] : memref<9x64x32xf32, #tpu.memory_space<vmem>>, vector<1x64x32xf32>
    %38 = vector.shape_cast %37 : vector<1x64x32xf32> to vector<64x32xf32>
    %cst_38 = arith.constant dense<0.000000e+00> : vector<128x32xf32>
    %39 = tpu.matmul %36, %38, %cst_38 {dimension_numbers = #tpu.dot_dimension_numbers<[1], [0], [0], [1], [0, 0, 1, 1], [], []>} : vector<128x64xf32>, vector<64x32xf32>, vector<128x32xf32> -> vector<128x32xf32>
    %40 = arith.addf %34, %39 : vector<128x32xf32>
    %c2_39 = arith.constant 2 : index
    %c8_40 = arith.constant 8 : index
    %c0_41 = arith.constant 0 : index
    %41 = vector.load %arg0[%c2_39, %c8_40, %c0_41] : memref<6x48x64xf32, #tpu.memory_space<vmem>>, vector<4x32x64xf32>
    %42 = vector.shape_cast %41 : vector<4x32x64xf32> to vector<128x64xf32>
    %c7 = arith.constant 7 : index
    %c0_42 = arith.constant 0 : index
    %c0_43 = arith.constant 0 : index
    %43 = vector.load %arg1[%c7, %c0_42, %c0_43] : memref<9x64x32xf32, #tpu.memory_space<vmem>>, vector<1x64x32xf32>
    %44 = vector.shape_cast %43 : vector<1x64x32xf32> to vector<64x32xf32>
    %cst_44 = arith.constant dense<0.000000e+00> : vector<128x32xf32>
    %45 = tpu.matmul %42, %44, %cst_44 {dimension_numbers = #tpu.dot_dimension_numbers<[1], [0], [0], [1], [0, 0, 1, 1], [], []>} : vector<128x64xf32>, vector<64x32xf32>, vector<128x32xf32> -> vector<128x32xf32>
    %46 = arith.addf %40, %45 : vector<128x32xf32>
    %c2_45 = arith.constant 2 : index
    %c16_46 = arith.constant 16 : index
    %c0_47 = arith.constant 0 : index
    %47 = vector.load %arg0[%c2_45, %c16_46, %c0_47] : memref<6x48x64xf32, #tpu.memory_space<vmem>>, vector<4x32x64xf32>
    %48 = vector.shape_cast %47 : vector<4x32x64xf32> to vector<128x64xf32>
    %c8_48 = arith.constant 8 : index
    %c0_49 = arith.constant 0 : index
    %c0_50 = arith.constant 0 : index
    %49 = vector.load %arg1[%c8_48, %c0_49, %c0_50] : memref<9x64x32xf32, #tpu.memory_space<vmem>>, vector<1x64x32xf32>
    %50 = vector.shape_cast %49 : vector<1x64x32xf32> to vector<64x32xf32>
    %cst_51 = arith.constant dense<0.000000e+00> : vector<128x32xf32>
    %51 = tpu.matmul %48, %50, %cst_51 {dimension_numbers = #tpu.dot_dimension_numbers<[1], [0], [0], [1], [0, 0, 1, 1], [], []>} : vector<128x64xf32>, vector<64x32xf32>, vector<128x32xf32> -> vector<128x32xf32>
    %52 = arith.addf %46, %51 : vector<128x32xf32>
    %c0_52 = arith.constant 0 : index
    %c0_53 = arith.constant 0 : index
    %53 = vector.load %arg2[%c0_52, %c0_53] : memref<1x32xf32, #tpu.memory_space<vmem>>, vector<1x32xf32>
    %54 = vector.broadcast %53 : vector<1x32xf32> to vector<128x32xf32>
    %55 = arith.addf %52, %54 : vector<128x32xf32>
    %cst_54 = arith.constant 0.000000e+00 : f32
    %56 = vector.broadcast %cst_54 : f32 to vector<128x32xf32>
    %57 = arith.maximumf %55, %56 : vector<128x32xf32>
    %58 = vector.extract_strided_slice %57 {offsets = [0, 0], sizes = [8, 32], strides = [1, 1]} : vector<128x32xf32> to vector<8x32xf32>
    %59 = vector.extract_strided_slice %57 {offsets = [8, 0], sizes = [8, 32], strides = [1, 1]} : vector<128x32xf32> to vector<8x32xf32>
    %60 = arith.maximumf %58, %59 : vector<8x32xf32>
    %61 = vector.extract_strided_slice %57 {offsets = [32, 0], sizes = [8, 32], strides = [1, 1]} : vector<128x32xf32> to vector<8x32xf32>
    %62 = vector.extract_strided_slice %57 {offsets = [40, 0], sizes = [8, 32], strides = [1, 1]} : vector<128x32xf32> to vector<8x32xf32>
    %63 = arith.maximumf %61, %62 : vector<8x32xf32>
    %64 = arith.maximumf %60, %63 : vector<8x32xf32>
    %65 = vector.extract_strided_slice %57 {offsets = [16, 0], sizes = [8, 32], strides = [1, 1]} : vector<128x32xf32> to vector<8x32xf32>
    %66 = vector.extract_strided_slice %57 {offsets = [24, 0], sizes = [8, 32], strides = [1, 1]} : vector<128x32xf32> to vector<8x32xf32>
    %67 = arith.maximumf %65, %66 : vector<8x32xf32>
    %68 = vector.extract_strided_slice %57 {offsets = [48, 0], sizes = [8, 32], strides = [1, 1]} : vector<128x32xf32> to vector<8x32xf32>
    %69 = vector.extract_strided_slice %57 {offsets = [56, 0], sizes = [8, 32], strides = [1, 1]} : vector<128x32xf32> to vector<8x32xf32>
    %70 = arith.maximumf %68, %69 : vector<8x32xf32>
    %71 = arith.maximumf %67, %70 : vector<8x32xf32>
    %72 = vector.extract_strided_slice %57 {offsets = [64, 0], sizes = [8, 32], strides = [1, 1]} : vector<128x32xf32> to vector<8x32xf32>
    %73 = vector.extract_strided_slice %57 {offsets = [72, 0], sizes = [8, 32], strides = [1, 1]} : vector<128x32xf32> to vector<8x32xf32>
    %74 = arith.maximumf %72, %73 : vector<8x32xf32>
    %75 = vector.extract_strided_slice %57 {offsets = [96, 0], sizes = [8, 32], strides = [1, 1]} : vector<128x32xf32> to vector<8x32xf32>
    %76 = vector.extract_strided_slice %57 {offsets = [104, 0], sizes = [8, 32], strides = [1, 1]} : vector<128x32xf32> to vector<8x32xf32>
    %77 = arith.maximumf %75, %76 : vector<8x32xf32>
    %78 = arith.maximumf %74, %77 : vector<8x32xf32>
    %79 = vector.extract_strided_slice %57 {offsets = [80, 0], sizes = [8, 32], strides = [1, 1]} : vector<128x32xf32> to vector<8x32xf32>
    %80 = vector.extract_strided_slice %57 {offsets = [88, 0], sizes = [8, 32], strides = [1, 1]} : vector<128x32xf32> to vector<8x32xf32>
    %81 = arith.maximumf %79, %80 : vector<8x32xf32>
    %82 = vector.extract_strided_slice %57 {offsets = [112, 0], sizes = [8, 32], strides = [1, 1]} : vector<128x32xf32> to vector<8x32xf32>
    %83 = vector.extract_strided_slice %57 {offsets = [120, 0], sizes = [8, 32], strides = [1, 1]} : vector<128x32xf32> to vector<8x32xf32>
    %84 = arith.maximumf %82, %83 : vector<8x32xf32>
    %85 = arith.maximumf %81, %84 : vector<8x32xf32>
    %86 = tpu.concatenate %64, %71, %78, %85 in 1 : vector<8x32xf32>, vector<8x32xf32>, vector<8x32xf32>, vector<8x32xf32> -> vector<8x128xf32>
    %c0_55 = arith.constant 0 : index
    %c0_56 = arith.constant 0 : index
    %87 = vector.load %arg3[%c0_55, %c0_56] : memref<128x128xf32, #tpu.memory_space<vmem>>, vector<128x128xf32>
    %cst_57 = arith.constant dense<0.000000e+00> : vector<8x128xf32>
    %88 = tpu.matmul %86, %87, %cst_57 {dimension_numbers = #tpu.dot_dimension_numbers<[1], [0], [0], [1], [0, 0, 1, 1], [], []>} : vector<8x128xf32>, vector<128x128xf32>, vector<8x128xf32> -> vector<8x128xf32>
    %c0_58 = arith.constant 0 : index
    %c0_59 = arith.constant 0 : index
    %89 = vector.load %arg4[%c0_58, %c0_59] : memref<1x128xf32, #tpu.memory_space<vmem>>, vector<1x128xf32>
    %90 = vector.broadcast %89 : vector<1x128xf32> to vector<8x128xf32>
    %91 = arith.addf %88, %90 : vector<8x128xf32>
    %c0_60 = arith.constant 0 : index
    %c0_61 = arith.constant 0 : index
    %92 = vector.load %arg5[%c0_60, %c0_61] : memref<8x128xf32, #tpu.memory_space<vmem>>, vector<8x128xf32>
    tpu.vector_store %arg5[%c0_60, %c0_61], %91 {strides = array<i32>} : memref<8x128xf32, #tpu.memory_space<vmem>>, vector<8x128xf32>,
    return
  }
}

</mosaic_0001>

<bundles_post_ra>
// kernel: decoder_forward.1
= control target key start
LH: loop header
LB: loop body
LE: loop exit
PB: predicated region body
PF: predicated region fallthrough
CT: control target
= control target key end

     0   :  { %vm57_vm0 = vcmask 523264   ;;  %s3451_s14 = smov 32   ;;  %vm3452_vm1 = vmmov 0   ;;  %vm2111_vm2 = vcmask 261120   ;;  %vm2114_vm3 = vcmask 785408   ;;  %s4258_s1 = inlined_call_operand.vmem [shape: f32[9,64,32], index: 1, kind: input, shape index: {}]   ;;  %s4259_s0 = inlined_call_operand.vmem [shape: f32[6,48,64], index: 0, kind: input, shape index: {}]   ;;  %s4260_s3 = inlined_call_operand.vmem [shape: f32[128,128], index: 3, kind: input, shape index: {}]   ;;  %s4261_s2 = inlined_call_operand.vmem [shape: f32[1,32], index: 2, kind: input, shape index: {}]   ;;  %s4262_s4 = inlined_call_operand.vmem [shape: f32[1,128], index: 4, kind: input, shape index: {}]   ;;  %s4263_s5 = inlined_call_operand.vmem [shape: f32[8,128], index: 5, kind: output, shape index: {}]  }
   0x1   :  { %v2214_v0 = vld [vmem:[%s4258_s1 + $0x40] sm:$0xff]  ;;  %v2215_v1 = vld [vmem:[%s4258_s1 + $0x48] sm:$0xff]  ;;  %v2216_v5 = vld [vmem:[%s4258_s1 + $0x50] sm:$0xff] }
   0x2   :  { %v2334_v2 = vld [vmem:[%s4258_s1 + $0x100] sm:$0xff]  ;;  %v3148_v3 = vpack.c.bf16 %v2215_v1, %v2214_v0  ;;  %v2335_v4 = vld [vmem:[%s4258_s1 + $0x108] sm:$0xff]  ;;  %v2217_v6 = vld [vmem:[%s4258_s1 + $0x58] sm:$0xff] }
   0x3   :  { %v3212_v7 = vpack.c.bf16 %v2335_v4, %v2334_v2  ;;  %v3152_v8 = vpack.c.bf16 %v2217_v6, %v2216_v5  ;;  %v2336_v9 = vld [vmem:[%s4258_s1 + $0x110] sm:$0xff]  ;;  %v2337_v10 = vld [vmem:[%s4258_s1 + $0x118] sm:$0xff]  ;;  %v2218_v11 = vld [vmem:[%s4258_s1 + $0x60] sm:$0xff] }
   0x4   :  { %3149 = vmatprep.subr.bf16.mxu1 %v3148_v3  ;;  %v3216_v12 = vpack.c.bf16 %v2337_v10, %v2336_v9  ;;  %v2219_v13 = vld [vmem:[%s4258_s1 + $0x68] sm:$0xff]  ;;  %v2338_v14 = vld [vmem:[%s4258_s1 + $0x120] sm:$0xff]  ;;  %v3530_v18 = vld [vmem:[%s4259_s0 + $0x38] sm:$0xff] }
   0x5   :  { %v2339_v15 = vld [vmem:[%s4258_s1 + $0x128] sm:$0xff]  ;;  %3213 = vmatprep.subr.bf16.mxu0 %v3212_v7  ;;  %3151 = vmatpush3.bf16.msra.mxu1 %v3148_v3  ;;  %v3156_v16 = vpack.c.bf16 %v2219_v13, %v2218_v11  ;;  %v2220_v20 = vld [vmem:[%s4258_s1 + $0x70] sm:$0xff]  ;;  %v2221_v21 = vld [vmem:[%s4258_s1 + $0x78] sm:$0xff] }
   0x6   :  { %3215 = vmatpush3.bf16.msra.mxu0 %v3212_v7  ;;  %3153 = vmatprep.subr.bf16.mxu1 %v3152_v8  ;;  %v3525_v17 = vld [vmem:[%s4259_s0 + $0x8] sm:$0xff]  ;;  %v3220_v19 = vpack.c.bf16 %v2339_v15, %v2338_v14  ;;  %v2340_v22 = vld [vmem:[%s4258_s1 + $0x130] sm:$0xff]  ;;  %v2341_v23 = vld [vmem:[%s4258_s1 + $0x138] sm:$0xff]  ;;  %v3160_v24 = vpack.c.bf16 %v2221_v21, %v2220_v20 }
   0x7   :  { %3217 = vmatprep.subr.bf16.mxu0 %v3216_v12  ;;  %2769 = vmatprep.mubr.msk.f32.mxu1 %vm57_vm0, %v3525_v17  ;;  %v3224_v25 = vpack.c.bf16 %v2341_v23, %v2340_v22  ;;  %v2374_v26 = vld [vmem:[%s4258_s1 + $0x140] sm:$0xff]  ;;  %v2375_v27 = vld [vmem:[%s4258_s1 + $0x148] sm:$0xff]  ;;  %v2376_v32 = vld [vmem:[%s4258_s1 + $0x150] sm:$0xff] }
   0x8   :  { %2929 = vmatprep.mubr.msk.f32.mxu0 %vm57_vm0, %v3530_v18  ;;  %v36_v28 = vld [vmem:[%s4258_s1] sm:$0xff]  ;;  %v37_v29 = vld [vmem:[%s4258_s1 + $0x8] sm:$0xff]  ;;  %v3228_v31 = vpack.c.bf16 %v2375_v27, %v2374_v26  ;;  %v2377_v33 = vld [vmem:[%s4258_s1 + $0x158] sm:$0xff] }
   0x9   :  { %3155 = vmatpush3.bf16.msra.mxu1 %v3152_v8  ;;  %v3164_v30 = vpack.c.bf16 %v37_v29, %v36_v28  ;;  %v3569_v34 = vld [vmem:[%s4259_s0 + $0x10] sm:$0xff]  ;;  %v39_v36 = vld [vmem:[%s4258_s1 + $0x18] sm:$0xff]  ;;  %v3580_v37 = vld [vmem:[%s4259_s0 + $0x40] sm:$0xff]  ;;  %v3232_v40 = vpack.c.bf16 %v2377_v33, %v2376_v32 }
   0xa   :  { %3219 = vmatpush3.bf16.msra.mxu0 %v3216_v12  ;;  %3157 = vmatprep.subr.bf16.mxu1 %v3156_v16  ;;  %v38_v35 = vld [vmem:[%s4258_s1 + $0x10] sm:$0xff]  ;;  %v3585_v38 = vld [vmem:[%s4259_s0 + $0x18] sm:$0xff]  ;;  %v3590_v39 = vld [vmem:[%s4259_s0 + $0x48] sm:$0xff] }
   0xb   :  { %3221 = vmatprep.subr.bf16.mxu0 %v3220_v19  ;;  %v2378_v41 = vld [vmem:[%s4258_s1 + $0x160] sm:$0xff]  ;;  %v2379_v42 = vld [vmem:[%s4258_s1 + $0x168] sm:$0xff]  ;;  %v3168_v43 = vpack.c.bf16 %v39_v36, %v38_v35  ;;  %v3620_v47 = vld [vmem:[%s4259_s0 + $0x50] sm:$0xff] }
   0xc   :  { %v3607_v44 = vld [vmem:[%s4259_s0 + $0x20] sm:$0xff]  ;;  %v41_v46 = vld [vmem:[%s4258_s1 + $0x28] sm:$0xff]  ;;  %v3236_v49 = vpack.c.bf16 %v2379_v42, %v2378_v41  ;;  %v2380_v51 = vld [vmem:[%s4258_s1 + $0x170] sm:$0xff] }
   0xd   :  { %3159 = vmatpush3.bf16.msra.mxu1 %v3156_v16  ;;  %v40_v45 = vld [vmem:[%s4258_s1 + $0x20] sm:$0xff]  ;;  %v3625_v48 = vld [vmem:[%s4259_s0 + $0x68] sm:$0xff]  ;;  %v2381_v52 = vld [vmem:[%s4258_s1 + $0x178] sm:$0xff] }
   0xe   :  { %3223 = vmatpush3.bf16.msra.mxu0 %v3220_v19  ;;  %3161 = vmatprep.subr.bf16.mxu1 %v3160_v24  ;;  %v3172_v50 = vpack.c.bf16 %v41_v46, %v40_v45  ;;  %v42_v53 = vld [vmem:[%s4258_s1 + $0x30] sm:$0xff]  ;;  %v43_v54 = vld [vmem:[%s4258_s1 + $0x38] sm:$0xff]  ;;  %v3240_v57 = vpack.c.bf16 %v2381_v52, %v2380_v51  ;;  %v2414_v59 = vld [vmem:[%s4258_s1 + $0x180] sm:$0xff] }
   0xf   :  { %3225 = vmatprep.subr.bf16.mxu0 %v3224_v25  ;;  %v3650_v55 = vld [vmem:[%s4259_s0 + $0x70] sm:$0xff]  ;;  %v3655_v56 = vld [vmem:[%s4259_s0 + $0x78] sm:$0xff]  ;;  %v3176_v58 = vpack.c.bf16 %v43_v54, %v42_v53  ;;  %v2415_v60 = vld [vmem:[%s4258_s1 + $0x188] sm:$0xff] }
  0x10   :  { %v2254_v61 = vld [vmem:[%s4258_s1 + $0x80] sm:$0xff]  ;;  %v2255_v62 = vld [vmem:[%s4258_s1 + $0x88] sm:$0xff]  ;;  %v3685_v0 = vld [vmem:[%s4259_s0 + $0x98] sm:$0xff]  ;;  %v3244_v1 = vpack.c.bf16 %v2415_v60, %v2414_v59 }
  0x11   :  { %3163 = vmatpush3.bf16.msra.mxu1 %v3160_v24  ;;  %v3680_v63 = vld [vmem:[%s4259_s0 + $0x80] sm:$0xff]  ;;  %v3180_v2 = vpack.c.bf16 %v2255_v62, %v2254_v61  ;;  %v3703_v4 = vld [vmem:[%s4259_s0 + $0xa8] sm:$0xff]  ;;  %v3716_v5 = vld [vmem:[%s4259_s0 + $0xb0] sm:$0xff] }
  0x12   :  { %3227 = vmatpush3.bf16.msra.mxu0 %v3224_v25  ;;  %3165 = vmatprep.subr.bf16.mxu1 %v3164_v30  ;;  %v3698_v3 = vld [vmem:[%s4259_s0 + $0xa0] sm:$0xff]  ;;  %v3721_v6 = vld [vmem:[%s4259_s0 + $0xc8] sm:$0xff]  ;;  %v3734_v7 = vld [vmem:[%s4259_s0 + $0xd0] sm:$0xff] }
  0x13   :  { %3229 = vmatprep.subr.bf16.mxu0 %v3228_v31  ;;  %v3739_v8 = vld [vmem:[%s4259_s0 + $0xd8] sm:$0xff]  ;;  %v3752_v9 = vld [vmem:[%s4259_s0 + $0xe0] sm:$0xff]  ;;  %v2416_v11 = vld [vmem:[%s4258_s1 + $0x190] sm:$0xff] }
  0x14   :  { %2770 = vmatmul.mubr.msk.f32.vlgmr.msra.gmra.mrb[0].mxu1 %vm57_vm0, %v3569_v34  ;;  %v20_v10 = vld [vmem:[%s4259_s0] sm:$0xff]  ;;  %v2417_v12 = vld [vmem:[%s4258_s1 + $0x198] sm:$0xff]  ;;  %v2256_v13 = vld [vmem:[%s4258_s1 + $0x90] sm:$0xff] }
  0x15   :  { %2930 = vmatmul.mubr.msk.f32.vlgmr.msra.gmra.mrb[0].mxu0 %vm57_vm0, %v3580_v37  ;;  %2772 = vmatprep.mubr.msk.f32.mxu1 %vm57_vm0, %v3585_v38  ;;  %v2257_v14 = vld [vmem:[%s4258_s1 + $0x98] sm:$0xff]  ;;  %v3248_v15 = vpack.c.bf16 %v2417_v12, %v2416_v11  ;;  %v2418_v16 = vld [vmem:[%s4258_s1 + $0x1a0] sm:$0xff]  ;;  %v2419_v19 = vld [vmem:[%s4258_s1 + $0x1a8] sm:$0xff] }
  0x16   :  { %3231 = vmatpush3.bf16.msra.mxu0 %v3228_v31  ;;  %2932 = vmatprep.mubr.msk.f32.mxu0 %vm57_vm0, %v3590_v39  ;;  %v3184_v20 = vpack.c.bf16 %v2257_v14, %v2256_v13  ;;  %v2258_v21 = vld [vmem:[%s4258_s1 + $0xa0] sm:$0xff]  ;;  %v3799_v22 = vld [vmem:[%s4259_s0 + $0x58] sm:$0xff]  ;;  %v3804_v23 = vld [vmem:[%s4259_s0 + $0x30] sm:$0xff]  ;;  %v3252_v24 = vpack.c.bf16 %v2419_v19, %v2418_v16 }
  0x17   :  { %3233 = vmatprep.subr.bf16.mxu0 %v3232_v40  ;;  %3167 = vmatpush3.bf16.msra.mxu1 %v3164_v30  ;;  %v2420_v26 = vld [vmem:[%s4258_s1 + $0x1b0] sm:$0xff]  ;;  %v2421_v27 = vld [vmem:[%s4258_s1 + $0x1b8] sm:$0xff]  ;;  %v2454_v32 = vld [vmem:[%s4258_s1 + $0x1c0] sm:$0xff] }
  0x18   :  { %2773 = vmatmul.mubr.msk.f32.gmra.mrb[2].mxu1 %vm57_vm0, %v3607_v44  ;;  %3169 = vmatprep.subr.bf16.mxu1 %v3168_v43  ;;  %v2260_v28 = vld [vmem:[%s4258_s1 + $0xb0] sm:$0xff]  ;;  %v2261_v29 = vld [vmem:[%s4258_s1 + $0xb8] sm:$0xff]  ;;  %v3256_v30 = vpack.c.bf16 %v2421_v27, %v2420_v26  ;;  %v2455_v33 = vld [vmem:[%s4258_s1 + $0x1c8] sm:$0xff] }
  0x19   :  { %2933 = vmatmul.mubr.msk.f32.gmra.mrb[2].mxu0 %vm57_vm0, %v3620_v47  ;;  %2775 = vmatprep.mubr.msk.f32.mxu1 %vm57_vm0, %v3530_v18  ;;  %v3192_v31 = vpack.c.bf16 %v2261_v29, %v2260_v28  ;;  %v2294_v35 = vld [vmem:[%s4258_s1 + $0xc0] sm:$0xff]  ;;  %v2295_v36 = vld [vmem:[%s4258_s1 + $0xc8] sm:$0xff]  ;;  %v3260_v42 = vpack.c.bf16 %v2455_v33, %v2454_v32  ;;  %v3875_v45 = vld [vmem:[%s4259_s0 + $0xb8] sm:$0xff] }
  0x1a   :  { %2935 = vmatprep.mubr.msk.f32.mxu0 %vm57_vm0, %v3625_v48  ;;  %3235 = vmatpush3.bf16.msra.mxu0 %v3232_v40  ;;  %v3849_v40 = vld [vmem:[%s4259_s0 + $0x88] sm:$0xff]  ;;  %v3854_v41 = vld [vmem:[%s4259_s0 + $0x60] sm:$0xff]  ;;  %v3880_v46 = vld [vmem:[%s4259_s0 + $0x90] sm:$0xff] }
  0x1b   :  { %3237 = vmatprep.subr.bf16.mxu0 %v3236_v49  ;;  %3171 = vmatpush3.bf16.msra.mxu1 %v3168_v43  ;;  %v3196_v43 = vpack.c.bf16 %v2295_v36, %v2294_v35  ;;  %v2457_v51 = vld [vmem:[%s4258_s1 + $0x1d8] sm:$0xff]  ;;  %v2296_v52 = vld [vmem:[%s4258_s1 + $0xd0] sm:$0xff]  ;;  %v411_v59 = vld [vmem:[%s4259_s0 + $0x28] sm:$0xff] }
  0x1c   :  { %2776 = vmatmul.mubr.msk.f32.gmra.mrb[4].mxu1 %vm57_vm0, %v3580_v37  ;;  %3173 = vmatprep.subr.bf16.mxu1 %v3172_v50  ;;  %v2297_v53 = vld [vmem:[%s4258_s1 + $0xd8] sm:$0xff]  ;;  %v2299_v60 = vld [vmem:[%s4258_s1 + $0xe8] sm:$0xff]  ;;  %v2460_v62 = vld [vmem:[%s4258_s1 + $0x1f0] sm:$0xff] }
  0x1d   :  { %2936 = vmatmul.mubr.msk.f32.gmra.mrb[4].mxu0 %vm57_vm0, %v3650_v55  ;;  %2778 = vmatprep.mubr.msk.f32.mxu1 %vm57_vm0, %v3590_v39  ;;  %v2494_v13 = vld [vmem:[%s4258_s1 + $0x200] sm:$0xff]  ;;  %v2495_v14 = vld [vmem:[%s4258_s1 + $0x208] sm:$0xff]  ;;  %v2411_v19 = vld [vmem:[%s4259_s0 + $0xf8] sm:$0xff] }
  0x1e   :  { %2938 = vmatprep.mubr.msk.f32.mxu0 %vm57_vm0, %v3655_v56  ;;  %3239 = vmatpush3.bf16.msra.mxu0 %v3236_v49  ;;  %v3901_v49 = vld [vmem:[%s4259_s0 + $0xe8] sm:$0xff]  ;;  %v3276_v16 = vpack.c.bf16 %v2495_v14, %v2494_v13  ;;  %v2501_v27 = vld [vmem:[%s4258_s1 + $0x238] sm:$0xff] }
  0x1f   :  { %3241 = vmatprep.subr.bf16.mxu0 %v3240_v57  ;;  %3175 = vmatpush3.bf16.msra.mxu1 %v3172_v50  ;;  %v2456_v50 = vld [vmem:[%s4258_s1 + $0x1d0] sm:$0xff]  ;;  %v2499_v26 = vld [vmem:[%s4258_s1 + $0x228] sm:$0xff]  ;;  %v2123_v28 = vld [vmem:[%s4260_s3 + $0x38] sm:$0xff] }
  0x20   :  { %2779 = vmatmul.mubr.msk.f32.gmra.mrb[6].mxu1 %vm57_vm0, %v3620_v47  ;;  %3177 = vmatprep.subr.bf16.mxu1 %v3176_v58  ;;  %v3264_v54 = vpack.c.bf16 %v2457_v51, %v2456_v50 }
  0x21   :  { %2939 = vmatmul.mubr.msk.f32.gmra.mrb[6].mxu0 %vm57_vm0, %v3680_v63  ;;  %2781 = vmatprep.mubr.msk.f32.mxu1 %vm57_vm0, %v3625_v48 }
  0x22   :  { %2941 = vmatprep.mubr.msk.f32.mxu0 %vm57_vm0, %v3685_v0  ;;  %3243 = vmatpush3.bf16.msra.mxu0 %v3240_v57  ;;  %v2458_v57 = vld [vmem:[%s4258_s1 + $0x1e0] sm:$0xff] }
  0x23   :  { %3179 = vmatpush3.bf16.msra.mxu1 %v3176_v58  ;;  %3245 = vmatprep.subr.bf16.mxu0 %v3244_v1  ;;  %v3200_v58 = vpack.c.bf16 %v2297_v53, %v2296_v52 }
  0x24   :  { %2782 = vmatmul.mubr.msk.f32.gmra.mrb[8].mxu1 %vm57_vm0, %v3650_v55  ;;  %3181 = vmatprep.subr.bf16.mxu1 %v3180_v2 }
  0x25   :  { %2942 = vmatmul.mubr.msk.f32.gmra.mrb[8].mxu0 %vm57_vm0, %v3698_v3  ;;  %2784 = vmatprep.mubr.msk.f32.mxu1 %vm57_vm0, %v3655_v56 }
  0x26   :  { %2944 = vmatprep.mubr.msk.f32.mxu0 %vm57_vm0, %v3703_v4 }
  0x28   :  { %2785 = vmatmul.mubr.msk.f32.gmra.mrb[10].mxu1 %vm57_vm0, %v3680_v63 }
  0x29   :  { %2945 = vmatmul.mubr.msk.f32.gmra.mrb[10].mxu0 %vm57_vm0, %v3716_v5  ;;  %2787 = vmatprep.mubr.msk.f32.mxu1 %vm57_vm0, %v3685_v0 }
  0x2a   :  { %2947 = vmatprep.mubr.msk.f32.mxu0 %vm57_vm0, %v3721_v6 }
  0x2c   :  { %2788 = vmatmul.mubr.msk.f32.gmra.mrb[12].mxu1 %vm57_vm0, %v3698_v3 }
  0x2d   :  { %2948 = vmatmul.mubr.msk.f32.gmra.mrb[12].mxu0 %vm57_vm0, %v3734_v7  ;;  %2790 = vmatprep.mubr.msk.f32.mxu1 %vm57_vm0, %v3703_v4 }
  0x2e   :  { %2950 = vmatprep.mubr.msk.f32.mxu0 %vm57_vm0, %v3739_v8 }
  0x30   :  { %2791 = vmatmul.mubr.msk.f32.gmra.mrb[14].mxu1 %vm57_vm0, %v3716_v5 }
  0x31   :  { %2951 = vmatmul.mubr.msk.f32.gmra.mrb[14].mxu0 %vm57_vm0, %v3752_v9  ;;  %2809 = vmatprep.mubr.msk.f32.mxu1 %vm57_vm0, %v20_v10  ;;  %v2301_v10 = vld [vmem:[%s4258_s1 + $0xf8] sm:$0xff] }
  0x32   :  { %2969 = vmatprep.mubr.msk.f32.mxu0 %vm57_vm0, %v3580_v37 }
  0x34   :  { %2810 = vmatmul.mubr.msk.f32.vlgmr.msra.gmra.mrb[0].mxu1 %vm57_vm0, %v3525_v17  ;;  %v2259_v17 = vld [vmem:[%s4258_s1 + $0xa8] sm:$0xff] }
  0x35   :  { %2970 = vmatmul.mubr.msk.f32.vlgmr.msra.gmra.mrb[0].mxu0 %vm57_vm0, %v3590_v39  ;;  %2812 = vmatprep.mubr.msk.f32.mxu1 %vm57_vm0, %v3569_v34  ;;  %v3188_v25 = vpack.c.bf16 %v2259_v17, %v2258_v21  ;;  %v4028_v21 = vld [vmem:[%s4259_s0 + $0x108] sm:$0xff]  ;;  %v2496_v17 = vld [vmem:[%s4258_s1 + $0x210] sm:$0xff] }
  0x36   :  { %3247 = vmatpush3.bf16.msra.mxu0 %v3244_v1  ;;  %2972 = vmatprep.mubr.msk.f32.mxu0 %vm57_vm0, %v3620_v47  ;;  %v2461_v1 = vld [vmem:[%s4258_s1 + $0x1f8] sm:$0xff] }
  0x37   :  { %3249 = vmatprep.subr.bf16.mxu0 %v3248_v15  ;;  %3183 = vmatpush3.bf16.msra.mxu1 %v3180_v2  ;;  %v2300_v2 = vld [vmem:[%s4258_s1 + $0xf0] sm:$0xff]  ;;  %v3272_v11 = vpack.c.bf16 %v2461_v1, %v2460_v62 }
  0x38   :  { %2813 = vmatmul.mubr.msk.f32.gmra.mrb[2].mxu1 %vm57_vm0, %v3585_v38  ;;  %3185 = vmatprep.subr.bf16.mxu1 %v3184_v20  ;;  %v3208_v12 = vpack.c.bf16 %v2301_v10, %v2300_v2 }
  0x39   :  { %2973 = vmatmul.mubr.msk.f32.gmra.mrb[2].mxu0 %vm57_vm0, %v3799_v22  ;;  %2815 = vmatprep.mubr.msk.f32.mxu1 %vm57_vm0, %v3804_v23 }
  0x3a   :  { %2975 = vmatprep.mubr.msk.f32.mxu0 %vm57_vm0, %v3650_v55  ;;  %3251 = vmatpush3.bf16.msra.mxu0 %v3248_v15  ;;  %v3982_v15 = vld [vmem:[%s4259_s0 + $0xc0] sm:$0xff] }
  0x3b   :  { %3253 = vmatprep.subr.bf16.mxu0 %v3252_v24  ;;  %3187 = vmatpush3.bf16.msra.mxu1 %v3184_v20  ;;  %v4016_v20 = vld [vmem:[%s4259_s0 + $0x100] sm:$0xff] }
  0x3c   :  { %2816 = vmatmul.mubr.msk.f32.gmra.mrb[4].mxu1 %vm57_vm0, %v3530_v18  ;;  %3189 = vmatprep.subr.bf16.mxu1 %v3188_v25 }
  0x3d   :  { %2976 = vmatmul.mubr.msk.f32.gmra.mrb[4].mxu0 %vm57_vm0, %v3655_v56  ;;  %2818 = vmatprep.mubr.msk.f32.mxu1 %vm57_vm0, %v3580_v37 }
  0x3e   :  { %2978 = vmatprep.mubr.msk.f32.mxu0 %vm57_vm0, %v3680_v63  ;;  %3255 = vmatpush3.bf16.msra.mxu0 %v3252_v24 }
  0x3f   :  { %3257 = vmatprep.subr.bf16.mxu0 %v3256_v30  ;;  %3191 = vmatpush3.bf16.msra.mxu1 %v3188_v25  ;;  %v2498_v25 = vld [vmem:[%s4258_s1 + $0x220] sm:$0xff] }
  0x40   :  { %2819 = vmatmul.mubr.msk.f32.gmra.mrb[6].mxu1 %vm57_vm0, %v3590_v39  ;;  %3193 = vmatprep.subr.bf16.mxu1 %v3192_v31 }
  0x41   :  { %2979 = vmatmul.mubr.msk.f32.gmra.mrb[6].mxu0 %vm57_vm0, %v3849_v40  ;;  %2821 = vmatprep.mubr.msk.f32.mxu1 %vm57_vm0, %v3854_v41 }
  0x42   :  { %2981 = vmatprep.mubr.msk.f32.mxu0 %vm57_vm0, %v3698_v3  ;;  %3259 = vmatpush3.bf16.msra.mxu0 %v3256_v30 }
  0x43   :  { %3195 = vmatpush3.bf16.msra.mxu1 %v3192_v31  ;;  %3261 = vmatprep.subr.bf16.mxu0 %v3260_v42 }
  0x44   :  { %2822 = vmatmul.mubr.msk.f32.gmra.mrb[8].mxu1 %vm57_vm0, %v3625_v48  ;;  %3197 = vmatprep.subr.bf16.mxu1 %v3196_v43 }
  0x45   :  { %2982 = vmatmul.mubr.msk.f32.gmra.mrb[8].mxu0 %vm57_vm0, %v3703_v4  ;;  %2824 = vmatprep.mubr.msk.f32.mxu1 %vm57_vm0, %v3650_v55 }
  0x46   :  { %2984 = vmatprep.mubr.msk.f32.mxu0 %vm57_vm0, %v3716_v5 }
  0x48   :  { %2825 = vmatmul.mubr.msk.f32.gmra.mrb[10].mxu1 %vm57_vm0, %v3655_v56 }
  0x49   :  { %2985 = vmatmul.mubr.msk.f32.gmra.mrb[10].mxu0 %vm57_vm0, %v3875_v45  ;;  %2827 = vmatprep.mubr.msk.f32.mxu1 %vm57_vm0, %v3880_v46 }
  0x4a   :  { %2987 = vmatprep.mubr.msk.f32.mxu0 %vm57_vm0, %v3734_v7 }
  0x4c   :  { %2828 = vmatmul.mubr.msk.f32.gmra.mrb[12].mxu1 %vm57_vm0, %v3685_v0 }
  0x4d   :  { %2988 = vmatmul.mubr.msk.f32.gmra.mrb[12].mxu0 %vm57_vm0, %v3739_v8  ;;  %2830 = vmatprep.mubr.msk.f32.mxu1 %vm57_vm0, %v3698_v3 }
  0x4e   :  { %2990 = vmatprep.mubr.msk.f32.mxu0 %vm57_vm0, %v3752_v9 }
  0x50   :  { %2831 = vmatmul.mubr.msk.f32.gmra.mrb[14].mxu1 %vm57_vm0, %v3703_v4 }
  0x51   :  { %2991 = vmatmul.mubr.msk.f32.gmra.mrb[14].mxu0 %vm57_vm0, %v3901_v49  ;;  %2849 = vmatprep.mubr.msk.f32.mxu1 %vm57_vm0, %v3569_v34  ;;  %v2459_v34 = vld [vmem:[%s4258_s1 + $0x1e8] sm:$0xff] }
  0x52   :  { %3009 = vmatprep.mubr.msk.f32.mxu0 %vm57_vm0, %v3854_v41  ;;  %v3268_v61 = vpack.c.bf16 %v2459_v34, %v2458_v57 }
  0x54   :  { %2850 = vmatmul.mubr.msk.f32.vlgmr.msra.gmra.mrb[0].mxu1 %vm57_vm0, %v3585_v38  ;;  %v2298_v38 = vld [vmem:[%s4258_s1 + $0xe0] sm:$0xff] }
  0x55   :  { %3010 = vmatmul.mubr.msk.f32.vlgmr.msra.gmra.mrb[0].mxu0 %vm57_vm0, %v3625_v48  ;;  %2852 = vmatprep.mubr.msk.f32.mxu1 %vm57_vm0, %v3607_v44  ;;  %v3204_v44 = vpack.c.bf16 %v2299_v60, %v2298_v38 }
  0x56   :  { %3263 = vmatpush3.bf16.msra.mxu0 %v3260_v42  ;;  %3012 = vmatprep.mubr.msk.f32.mxu0 %vm57_vm0, %v3650_v55 }
  0x57   :  { %3265 = vmatprep.subr.bf16.mxu0 %v3264_v54  ;;  %3199 = vmatpush3.bf16.msra.mxu1 %v3196_v43 }
  0x58   :  { %2853 = vmatmul.mubr.msk.f32.gmra.mrb[2].mxu1 %vm57_vm0, %v411_v59  ;;  %3201 = vmatprep.subr.bf16.mxu1 %v3200_v58 }
  0x59   :  { %3013 = vmatmul.mubr.msk.f32.gmra.mrb[2].mxu0 %vm57_vm0, %v3655_v56  ;;  %2855 = vmatprep.mubr.msk.f32.mxu1 %vm57_vm0, %v3580_v37 }
  0x5a   :  { %3015 = vmatprep.mubr.msk.f32.mxu0 %vm57_vm0, %v3880_v46  ;;  %3267 = vmatpush3.bf16.msra.mxu0 %v3264_v54  ;;  %v4194_v54 = vld [vmem:[%s4261_s2] ss:$0 sm:$0xff] }
  0x5b   :  { %3269 = vmatprep.subr.bf16.mxu0 %v3268_v61  ;;  %3203 = vmatpush3.bf16.msra.mxu1 %v3200_v58 }
  0x5c   :  { %2856 = vmatmul.mubr.msk.f32.gmra.mrb[4].mxu1 %vm57_vm0, %v3590_v39  ;;  %3205 = vmatprep.subr.bf16.mxu1 %v3204_v44 }
  0x5d   :  { %3016 = vmatmul.mubr.msk.f32.gmra.mrb[4].mxu0 %vm57_vm0, %v3685_v0  ;;  %2858 = vmatprep.mubr.msk.f32.mxu1 %vm57_vm0, %v3620_v47  ;;  %v2410_v47 = vld [vmem:[%s4259_s0 + $0xf0] sm:$0xff] }
  0x5e   :  { %3018 = vmatprep.mubr.msk.f32.mxu0 %vm57_vm0, %v3698_v3  ;;  %3271 = vmatpush3.bf16.msra.mxu0 %v3268_v61 }
  0x5f   :  { %3273 = vmatprep.subr.bf16.mxu0 %v3272_v11  ;;  %3207 = vmatpush3.bf16.msra.mxu1 %v3204_v44 }
  0x60   :  { %2859 = vmatmul.mubr.msk.f32.gmra.mrb[6].mxu1 %vm57_vm0, %v3799_v22  ;;  %3209 = vmatprep.subr.bf16.mxu1 %v3208_v12  ;;  %v2497_v22 = vld [vmem:[%s4258_s1 + $0x218] sm:$0xff] }
  0x61   :  { %3019 = vmatmul.mubr.msk.f32.gmra.mrb[6].mxu0 %vm57_vm0, %v3703_v4  ;;  %2861 = vmatprep.mubr.msk.f32.mxu1 %vm57_vm0, %v3650_v55  ;;  %v3280_v24 = vpack.c.bf16 %v2497_v22, %v2496_v17 }
  0x62   :  { %3021 = vmatprep.mubr.msk.f32.mxu0 %vm57_vm0, %v3982_v15  ;;  %3275 = vmatpush3.bf16.msra.mxu0 %v3272_v11 }
  0x63   :  { %3211 = vmatpush3.bf16.msra.mxu1 %v3208_v12  ;;  %3277 = vmatprep.subr.bf16.mxu0 %v3276_v16 }
  0x64   :  { %2862 = vmatmul.mubr.msk.f32.gmra.mrb[8].mxu1 %vm57_vm0, %v3655_v56 }
  0x65   :  { %3022 = vmatmul.mubr.msk.f32.gmra.mrb[8].mxu0 %vm57_vm0, %v3721_v6  ;;  %2864 = vmatprep.mubr.msk.f32.mxu1 %vm57_vm0, %v3680_v63 }
  0x66   :  { %3024 = vmatprep.mubr.msk.f32.mxu0 %vm57_vm0, %v3734_v7 }
  0x68   :  { %2865 = vmatmul.mubr.msk.f32.gmra.mrb[10].mxu1 %vm57_vm0, %v3849_v40 }
  0x69   :  { %3025 = vmatmul.mubr.msk.f32.gmra.mrb[10].mxu0 %vm57_vm0, %v3739_v8  ;;  %2867 = vmatprep.mubr.msk.f32.mxu1 %vm57_vm0, %v3698_v3 }
  0x6a   :  { %3027 = vmatprep.mubr.msk.f32.mxu0 %vm57_vm0, %v2410_v47 }
  0x6c   :  { %2868 = vmatmul.mubr.msk.f32.gmra.mrb[12].mxu1 %vm57_vm0, %v3703_v4 }
  0x6d   :  { %3028 = vmatmul.mubr.msk.f32.gmra.mrb[12].mxu0 %vm57_vm0, %v2411_v19  ;;  %2870 = vmatprep.mubr.msk.f32.mxu1 %vm57_vm0, %v3716_v5 }
  0x6e   :  { %3030 = vmatprep.mubr.msk.f32.mxu0 %vm57_vm0, %v4016_v20 }
  0x70   :  { %2871 = vmatmul.mubr.msk.f32.gmra.mrb[14].mxu1 %vm57_vm0, %v3875_v45 }
  0x71   :  { %3031 = vmatmul.mubr.msk.f32.gmra.mrb[14].mxu0 %vm57_vm0, %v4028_v21  ;;  %2889 = vmatprep.mubr.msk.f32.mxu1 %vm57_vm0, %v3804_v23  ;;  %v2500_v23 = vld [vmem:[%s4258_s1 + $0x230] sm:$0xff] }
  0x72   :  { %3049 = vmatprep.mubr.msk.f32.mxu0 %vm57_vm0, %v3625_v48 }
  0x74   :  { %2890 = vmatmul.mubr.msk.f32.vlgmr.msra.gmra.mrb[0].mxu1 %vm57_vm0, %v3530_v18  ;;  %v3284_v18 = vpack.c.bf16 %v2499_v26, %v2498_v25  ;;  %v2127_v25 = vld [vmem:[%s4260_s3 + $0x58] sm:$0xff] }
  0x75   :  { %3050 = vmatmul.mubr.msk.f32.vlgmr.msra.gmra.mrb[0].mxu0 %vm57_vm0, %v3650_v55  ;;  %2892 = vmatprep.mubr.msk.f32.mxu1 %vm57_vm0, %v3580_v37  ;;  %v3288_v37 = vpack.c.bf16 %v2501_v27, %v2500_v23 }
  0x76   :  { %3279 = vmatpush3.bf16.msra.mxu0 %v3276_v16  ;;  %3052 = vmatprep.mubr.msk.f32.mxu0 %vm57_vm0, %v3655_v56 }
  0x77   :  { %3281 = vmatprep.subr.bf16.mxu0 %v3280_v24 }
  0x78   :  { %2893 = vmatmul.mubr.msk.f32.gmra.mrb[2].mxu1 %vm57_vm0, %v3590_v39  ;;  %v2453_v39 = vld [vmem:[%s4259_s0 + $0x110] sm:$0xff] }
  0x79   :  { %3053 = vmatmul.mubr.msk.f32.gmra.mrb[2].mxu0 %vm57_vm0, %v3680_v63  ;;  %2895 = vmatprep.mubr.msk.f32.mxu1 %vm57_vm0, %v3854_v41 }
  0x7a   :  { %3055 = vmatprep.mubr.msk.f32.mxu0 %vm57_vm0, %v3685_v0  ;;  %3283 = vmatpush3.bf16.msra.mxu0 %v3280_v24  ;;  %v2126_v24 = vld [vmem:[%s4260_s3 + $0x50] sm:$0xff] }
  0x7b   :  { %3285 = vmatprep.subr.bf16.mxu0 %v3284_v18 }
  0x7c   :  { %2896 = vmatmul.mubr.msk.f32.gmra.mrb[4].mxu1 %vm57_vm0, %v3625_v48  ;;  %v2493_v48 = vld [vmem:[%s4259_s0 + $0x118] sm:$0xff]  ;;  %s3455_s0 = smov 96  }
  0x7d   :  { %3056 = vmatmul.mubr.msk.f32.gmra.mrb[4].mxu0 %vm57_vm0, %v3698_v3  ;;  %2898 = vmatprep.mubr.msk.f32.mxu1 %vm57_vm0, %v3650_v55 }
  0x7e   :  { %3058 = vmatprep.mubr.msk.f32.mxu0 %vm57_vm0, %v3703_v4  ;;  %3287 = vmatpush3.bf16.msra.mxu0 %v3284_v18 }
  0x7f   :  { %3289 = vmatprep.subr.bf16.mxu0 %v3288_v37 }
  0x80   :  { %2899 = vmatmul.mubr.msk.f32.gmra.mrb[6].mxu1 %vm57_vm0, %v3655_v56 }
  0x81   :  { %3059 = vmatmul.mubr.msk.f32.gmra.mrb[6].mxu0 %vm57_vm0, %v3716_v5  ;;  %2901 = vmatprep.mubr.msk.f32.mxu1 %vm57_vm0, %v3880_v46 }
  0x82   :  { %3061 = vmatprep.mubr.msk.f32.mxu0 %vm57_vm0, %v3721_v6  ;;  %3291 = vmatpush3.bf16.msra.mxu0 %v3288_v37 }
  0x84   :  { %2902 = vmatmul.mubr.msk.f32.gmra.mrb[8].mxu1 %vm57_vm0, %v3685_v0  ;;  %v2118_v0 = vld [vmem:[%s4260_s3 + $0x10] sm:$0xff] }
  0x85   :  { %3062 = vmatmul.mubr.msk.f32.gmra.mrb[8].mxu0 %vm57_vm0, %v3734_v7  ;;  %2904 = vmatprep.mubr.msk.f32.mxu1 %vm57_vm0, %v3698_v3 }
  0x86   :  { %3064 = vmatprep.mubr.msk.f32.mxu0 %vm57_vm0, %v3739_v8 }
  0x88   :  { %2905 = vmatmul.mubr.msk.f32.gmra.mrb[10].mxu1 %vm57_vm0, %v3703_v4 }
  0x89   :  { %3065 = vmatmul.mubr.msk.f32.gmra.mrb[10].mxu0 %vm57_vm0, %v3752_v9  ;;  %2907 = vmatprep.mubr.msk.f32.mxu1 %vm57_vm0, %v3982_v15 }
  0x8a   :  { %3067 = vmatprep.mubr.msk.f32.mxu0 %vm57_vm0, %v2411_v19 }
  0x8c   :  { %2908 = vmatmul.mubr.msk.f32.gmra.mrb[12].mxu1 %vm57_vm0, %v3721_v6  ;;  %v2120_v6 = vld [vmem:[%s4260_s3 + $0x20] sm:$0xff] }
  0x8d   :  { %3068 = vmatmul.mubr.msk.f32.gmra.mrb[12].mxu0 %vm57_vm0, %v4016_v20  ;;  %2910 = vmatprep.mubr.msk.f32.mxu1 %vm57_vm0, %v3734_v7 }
  0x8e   :  { %3070 = vmatprep.mubr.msk.f32.mxu0 %vm57_vm0, %v4028_v21 }
  0x90   :  { %2911 = vmatmul.mubr.msk.f32.gmra.mrb[14].mxu1 %vm57_vm0, %v3739_v8 }
  0x91   :  { %3071 = vmatmul.mubr.msk.f32.gmra.mrb[14].mxu0 %vm57_vm0, %v2453_v39 }
  0x92   :  { %3089 = vmatprep.mubr.msk.f32.mxu0 %vm57_vm0, %v3650_v55  ;;  %v3450_v55 = vmov 0.0|0.0  }
  0x93   :  { %3292 = vmatprep.subr.bf16.mxu1 %v3450_v55 }
  0x95   :  { %3090 = vmatmul.mubr.msk.f32.vlgmr.msra.gmra.mrb[0].mxu0 %vm57_vm0, %v3655_v56  ;;  %v2116_v56 = vld [vmem:[%s4260_s3] sm:$0xff] }
  0x96   :  { %3092 = vmatprep.mubr.msk.f32.mxu0 %vm57_vm0, %v3680_v63  ;;  %v2117_v63 = vld [vmem:[%s4260_s3 + $0x8] sm:$0xff] }
  0x99   :  { %3093 = vmatmul.mubr.msk.f32.gmra.mrb[2].mxu0 %vm57_vm0, %v3849_v40 }
  0x9a   :  { %3095 = vmatprep.mubr.msk.f32.mxu0 %vm57_vm0, %v3698_v3  ;;  %v3293_v3 = vpack.c.bf16 %v2117_v63, %v2116_v56 }
  0x9c   :  { %3294 = vmatpush3.bf16.msra.mxu1 %v3293_v3  ;;  %v2129_v3 = vld [vmem:[%s4260_s3 + $0x68] sm:$0xff] }
  0x9d   :  { %3096 = vmatmul.mubr.msk.f32.gmra.mrb[4].mxu0 %vm57_vm0, %v3703_v4  ;;  %v2119_v4 = vld [vmem:[%s4260_s3 + $0x18] sm:$0xff]  ;;  %3295 = vmatprep.subr.bf16.mxu1 %v3450_v55 }
  0x9e   :  { %3098 = vmatprep.mubr.msk.f32.mxu0 %vm57_vm0, %v3716_v5  ;;  %v3296_v5 = vpack.c.bf16 %v2119_v4, %v2118_v0  ;;  %v2128_v0 = vld [vmem:[%s4260_s3 + $0x60] sm:$0xff] }
  0xa0   :  { %3297 = vmatpush3.bf16.msra.mxu1 %v3296_v5 }
  0xa1   :  { %3099 = vmatmul.mubr.msk.f32.gmra.mrb[6].mxu0 %vm57_vm0, %v3875_v45  ;;  %3298 = vmatprep.subr.bf16.mxu1 %v3450_v55 }
  0xa2   :  { %3101 = vmatprep.mubr.msk.f32.mxu0 %vm57_vm0, %v3734_v7  ;;  %v2121_v7 = vld [vmem:[%s4260_s3 + $0x28] sm:$0xff] }
  0xa5   :  { %3102 = vmatmul.mubr.msk.f32.gmra.mrb[8].mxu0 %vm57_vm0, %v3739_v8  ;;  %v3299_v8 = vpack.c.bf16 %v2121_v7, %v2120_v6 }
  0xa6   :  { %3104 = vmatprep.mubr.msk.f32.mxu0 %vm57_vm0, %v3752_v9  ;;  %v2122_v9 = vld [vmem:[%s4260_s3 + $0x30] sm:$0xff] }
  0xa7   :  { %3300 = vmatpush3.bf16.msra.mxu1 %v3299_v8  ;;  %v3302_v29 = vpack.c.bf16 %v2123_v28, %v2122_v9 }
  0xa8   :  { %3301 = vmatprep.subr.bf16.mxu1 %v3450_v55 }
  0xa9   :  { %3105 = vmatmul.mubr.msk.f32.gmra.mrb[10].mxu0 %vm57_vm0, %v3901_v49 }
  0xaa   :  { %3107 = vmatprep.mubr.msk.f32.mxu0 %vm57_vm0, %v4016_v20  ;;  %v2124_v20 = vld [vmem:[%s4260_s3 + $0x40] sm:$0xff] }
  0xab   :  { %3303 = vmatpush3.bf16.msra.mxu1 %v3302_v29  ;;  %v3311_v29 = vpack.c.bf16 %v2129_v3, %v2128_v0 }
  0xac   :  { %3304 = vmatprep.subr.bf16.mxu1 %v3450_v55 }
  0xad   :  { %3108 = vmatmul.mubr.msk.f32.gmra.mrb[12].mxu0 %vm57_vm0, %v4028_v21  ;;  %v2125_v21 = vld [vmem:[%s4260_s3 + $0x48] sm:$0xff] }
  0xae   :  { %3110 = vmatprep.mubr.msk.f32.mxu0 %vm57_vm0, %v2453_v39  ;;  %v3305_v22 = vpack.c.bf16 %v2125_v21, %v2124_v20 }
  0xb0   :  { %3306 = vmatpush3.bf16.msra.mxu1 %v3305_v22 }
  0xb1   :  { %3111 = vmatmul.mubr.msk.f32.gmra.mrb[14].mxu0 %vm57_vm0, %v2493_v48  ;;  %v3308_v48 = vpack.c.bf16 %v2127_v25, %v2126_v24  ;;  %3307 = vmatprep.subr.bf16.mxu1 %v3450_v55 }
  0xb4   :  { %3309 = vmatpush3.bf16.msra.mxu1 %v3308_v48 }
  0xb5   :  { %3310 = vmatprep.subr.bf16.mxu1 %v3450_v55 }
  0xb8   :  { %3312 = vmatpush3.bf16.msra.mxu1 %v3311_v29 }
  0xb9   :  { %3313 = vmatprep.subr.bf16.mxu1 %v3450_v55 }
 0x147   :  { %v2891_v30 = vpop.f32.mrb[0].mxu1 }
 0x148   :  { %v782_v31 = vpop.f32.mrb[1].mxu1 }
 0x14b   :  { %v2894_v32 = vpop.f32.mrb[2].mxu1 }
 0x14c   :  { %v792_v33 = vpop.f32.mrb[3].mxu1 }
 0x14f   :  { %v2897_v35 = vpop.f32.mrb[4].mxu1 }
 0x150   :  { %v802_v36 = vpop.f32.mrb[5].mxu1 }
 0x153   :  { %v2900_v40 = vpop.f32.mrb[6].mxu1 }
 0x154   :  { %v812_v41 = vpop.f32.mrb[7].mxu1 }
 0x157   :  { %v2903_v42 = vpop.f32.mrb[8].mxu1 }
 0x158   :  { %v822_v43 = vpop.f32.mrb[9].mxu1 }
 0x15b   :  { %v4179_v45 = vpop.f32.mrb[10].mxu1 }
 0x15c   :  { %v4181_v46 = vpop.f32.mrb[11].mxu1 }
 0x15f   :  { %v4183_v49 = vpop.f32.mrb[12].mxu1 }
 0x160   :  { %v4185_v50 = vpop.f32.mrb[13].mxu1 }
 0x163   :  { %v4187_v51 = vpop.f32.mrb[14].mxu1 }
 0x164   :  { %v4189_v52 = vpop.f32.mrb[15].mxu1 }
 0x168   :  { %v3091_v53 = vpop.f32.mrb[0].mxu0 }
 0x169   :  { %v3316_v57 = vadd.f32 %v3091_v53, %v2891_v30  ;;  %v1953_v34 = vpop.f32.mrb[1].mxu0 }
 0x16a   :  { %v3317_v58 = vadd.f32 %v1953_v34, %v782_v31 }
 0x16b   :  { %v2056_v59 = vadd.f32 %v3316_v57, %v4194_v54 }
 0x16c   :  { %v2055_v38 = vadd.f32 %v3317_v58, %v4194_v54  ;;  %v3094_v60 = vpop.f32.mrb[2].mxu0  ;;  %v2130_v58 = vld [vmem:[%s4260_s3 + $0x70] sm:$0xff] }
 0x16d   :  { %v2072_v61 = vmax.f32 %v2056_v59, 0.0  ;;  %v3318_v44 = vadd.f32 %v3094_v60, %v2894_v32  ;;  %v1963_v62 = vpop.f32.mrb[3].mxu0  ;;  %v2131_v59 = vld [vmem:[%s4260_s3 + $0x78] sm:$0xff]  ;;  %s3454_s3 = smov 64  }
 0x16e   :  { %v2071_v1 = vmax.f32 %v2055_v38, 0.0  ;;  %v3319_v2 = vadd.f32 %v1963_v62, %v792_v33  ;;  %v3314_v60 = vpack.c.bf16 %v2131_v59, %v2130_v58 }
 0x16f   :  { %v2058_v10 = vadd.f32 %v3318_v44, %v4194_v54 }
 0x170   :  { %v4199_v11 = vmax.f32 %v2071_v1, %v2072_v61  ;;  %v2057_v12 = vadd.f32 %v3319_v2, %v4194_v54  ;;  %v3097_v13 = vpop.f32.mrb[4].mxu0  ;;  %3315 = vmatpush3.bf16.msra.mxu1 %v3314_v60 }
 0x171   :  { %v2074_v14 = vmax.f32 %v2058_v10, 0.0  ;;  %v3320_v15 = vadd.f32 %v3097_v13, %v2897_v35  ;;  %v1973_v16 = vpop.f32.mrb[5].mxu0 }
 0x172   :  { %v2073_v47 = vmax.f32 %v2057_v12, 0.0  ;;  %v3321_v19 = vadd.f32 %v1973_v16, %v802_v36 }
 0x173   :  { %v2060_v17 = vadd.f32 %v3320_v15, %v4194_v54 }
 0x174   :  { %v2059_v26 = vadd.f32 %v3321_v19, %v4194_v54  ;;  %v3100_v18 = vpop.f32.mrb[6].mxu0  ;;  %v2090_v23 = vmax.f32 %v2073_v47, %v2074_v14 }
 0x175   :  { %v2076_v27 = vmax.f32 %v2060_v17, 0.0  ;;  %v3322_v37 = vadd.f32 %v3100_v18, %v2900_v40  ;;  %v1983_v39 = vpop.f32.mrb[7].mxu0 }
 0x176   :  { %v2075_v56 = vmax.f32 %v2059_v26, 0.0  ;;  %v3323_v63 = vadd.f32 %v1983_v39, %v812_v41 }
 0x177   :  { %v2062_v4 = vadd.f32 %v3322_v37, %v4194_v54 }
 0x178   :  { %v4224_v5 = vmax.f32 %v2075_v56, %v2076_v27  ;;  %v2061_v6 = vadd.f32 %v3323_v63, %v4194_v54  ;;  %v3103_v7 = vpop.f32.mrb[8].mxu0 }
 0x179   :  { %v2078_v8 = vmax.f32 %v2062_v4, 0.0  ;;  %v3324_v9 = vadd.f32 %v3103_v7, %v2903_v42  ;;  %v1993_v28 = vpop.f32.mrb[9].mxu0 }
 0x17a   :  { %v2077_v30 = vmax.f32 %v2061_v6, 0.0  ;;  %v3325_v31 = vadd.f32 %v1993_v28, %v822_v43  ;;  %v2089_v32 = vmax.f32 %v4199_v11, %v4224_v5  ;;  %v3453_v11 = vmov 0.0  }
 0x17b   :  { %v2064_v33 = vadd.f32 %v3324_v9, %v4194_v54  ;;  %3145 = vmatprep.mubr.msk.f32.mxu1 %vm3452_vm1, %v3453_v11 }
 0x17c   :  { %v2063_v35 = vadd.f32 %v3325_v31, %v4194_v54  ;;  %v3106_v36 = vpop.f32.mrb[10].mxu0  ;;  %v2091_v40 = vmax.f32 %v2077_v30, %v2078_v8 }
 0x17d   :  { %v2080_v41 = vmax.f32 %v2064_v33, 0.0  ;;  %v3326_v53 = vadd.f32 %v3106_v36, %v4179_v45  ;;  %v2003_v42 = vpop.f32.mrb[11].mxu0 }
 0x17e   :  { %v2079_v57 = vmax.f32 %v2063_v35, 0.0  ;;  %v3327_v34 = vadd.f32 %v2003_v42, %v4181_v46  ;;  %v2092_v43 = vmax.f32 %v2090_v23, %v2091_v40 }
 0x17f   :  { %v2066_v38 = vadd.f32 %v3326_v53, %v4194_v54 }
 0x180   :  { %v2093_v45 = vmax.f32 %v2079_v57, %v2080_v41  ;;  %v2065_v61 = vadd.f32 %v3327_v34, %v4194_v54  ;;  %v3109_v44 = vpop.f32.mrb[12].mxu0  ;;  %2100 = vrot.lane.b32.xlu0 %v2092_v43, %s3451_s14 }
 0x181   :  { %v2082_v46 = vmax.f32 %v2066_v38, 0.0  ;;  %v3328_v55 = vadd.f32 %v3109_v44, %v4183_v49  ;;  %v2013_v62 = vpop.f32.mrb[13].mxu0 }
 0x182   :  { %v2081_v1 = vmax.f32 %v2065_v61, 0.0  ;;  %v3329_v2 = vadd.f32 %v2013_v62, %v4185_v50 }
 0x183   :  { %v2068_v10 = vadd.f32 %v3328_v55, %v4194_v54 }
 0x184   :  { %v2067_v12 = vadd.f32 %v3329_v2, %v4194_v54  ;;  %v3112_v13 = vpop.f32.mrb[14].mxu0  ;;  %v2096_v14 = vmax.f32 %v2081_v1, %v2082_v46 }
 0x185   :  { %v2084_v15 = vmax.f32 %v2068_v10, 0.0  ;;  %v3330_v16 = vadd.f32 %v3112_v13, %v4187_v51  ;;  %v2023_v47 = vpop.f32.mrb[15].mxu0 }
 0x186   :  { %v2083_v19 = vmax.f32 %v2067_v12, 0.0  ;;  %v3331_v49 = vadd.f32 %v2023_v47, %v4189_v52 }
 0x187   :  { %v2070_v20 = vadd.f32 %v3330_v16, %v4194_v54 }
 0x188   :  { %v2094_v21 = vmax.f32 %v2083_v19, %v2084_v15  ;;  %v2069_v50 = vadd.f32 %v3331_v49, %v4194_v54  ;;  %v2519_v54 = vld [vmem:[%s4262_s4] ss:$0 sm:$0xff] }
 0x189   :  { %v2086_v17 = vmax.f32 %v2070_v20, 0.0 }
 0x18a   :  { %v2085_v22 = vmax.f32 %v2069_v50, 0.0  ;;  %v2095_v24 = vmax.f32 %v2093_v45, %v2094_v21 }
 0x18c   :  { %2104 = vrot.lane.b32.xlu0 %v2095_v24, %s3454_s3  ;;  %v2097_v25 = vmax.f32 %v2085_v22, %v2086_v17 }
 0x18e   :  { %v2098_v26 = vmax.f32 %v2096_v14, %v2097_v25 }
 0x190   :  { %2108 = vrot.lane.b32.xlu1 %v2098_v26, %s3455_s0 }
 0x1f2   :  { %v2101_v18 = vpop.permute.xlu0 %2100 }
 0x1f3   :  { %v2112_v23 = vsel %vm2111_vm2, %v2089_v32, %v2101_v18 }
 0x1fe   :  { %v2105_v51 = vpop.permute.xlu0 %2104 }
 0x1ff   :  { %v2113_v52 = vsel %vm57_vm0, %v2112_v23, %v2105_v51 }
 0x202   :  { %v2109_v27 = vpop.permute.xlu1 %2108 }
 0x203   :  { %v2115_v37 = vsel %vm2114_vm3, %v2113_v52, %v2109_v27 }
 0x204   :  { %3146 = vmatmul.mubr.f32.vlgmr.msra.gmra.mrb[16].mxu1 %v2115_v37 }
 0x2d7   :  { %v2205_v39 = vpop.f32.mrb[16].mxu1 }
 0x2d8   :  { %v2206_v48 = vadd.f32 %v2519_v54, %v2205_v39  ;;  %v3147_v56 = vpop.f32.mrb[17].mxu1 }
 0x2da   :  { %2209 = vst [vmem:[%s4263_s5] sm:$0xff] %v2206_v48 }

</bundles_post_ra>
